<compile_context>
chip_gen: v5e
topology: v5e:2x2
jax: 0.10.0
libtpu: 0.0.40
codegen_flags: <defaults>
</compile_context>

<pallas_src>
import functools

import jax
import jax.numpy as jnp
from jax.experimental import pallas as pl
from jax.experimental.pallas import tpu as pltpu

EPS = 1e-5  # matches nn.InstanceNorm2d default eps


def _round_up(x, m):
    return ((x + m - 1) // m) * m


def _vmem_capacity_bytes():
    """Physical VMEM per core; conservative (v7x-sized) fallback."""
    try:
        info = pltpu.get_tpu_info()
        cap = getattr(info, "vmem_capacity_bytes", None)
        if cap:
            return int(cap)
    except Exception:
        pass
    return 64 * 1024 * 1024


def _adain_kernel(gamma_ref, beta_ref, x_ref, o_ref, *, hw_true, hw_pad):
    # gamma_ref/beta_ref: (1, TC, 1) float32
    # x_ref/o_ref       : (1, TC, HW_pad)
    x = x_ref[...].astype(jnp.float32)

    if hw_pad == hw_true:
        mean = jnp.mean(x, axis=-1, keepdims=True)                 # (1, TC, 1)
        diff = x - mean
        var = jnp.mean(diff * diff, axis=-1, keepdims=True)
    else:
        # Padded lanes must not pollute the statistics; divide by the true HW.
        inv_n = 1.0 / float(hw_true)
        lane = jax.lax.broadcasted_iota(jnp.int32, x.shape, dimension=2)
        mask = lane < hw_true
        xm = jnp.where(mask, x, 0.0)
        mean = jnp.sum(xm, axis=-1, keepdims=True) * inv_n
        diff = jnp.where(mask, x - mean, 0.0)
        var = jnp.sum(diff * diff, axis=-1, keepdims=True) * inv_n

    # Fused normalize + modulate: out = x*scale + shift
    scale = (1.0 + gamma_ref[...]) * jax.lax.rsqrt(var + EPS)      # (1, TC, 1)
    shift = beta_ref[...] - mean * scale
    o_ref[...] = (x * scale + shift).astype(o_ref.dtype)


def adain_pallas(x, s, fc_w, fc_b):
    """x: (N, C, H, W); s: (N, style_dim); fc_w: (2C, style_dim); fc_b: (2C,)."""
    N, C, H, W = x.shape
    HW = H * W
    itemsize = jnp.dtype(x.dtype).itemsize

    # ---- style FC hoisted out of the kernel (one small XLA matmul) -------
    h = (s @ fc_w.T + fc_b).astype(jnp.float32)      # (N, 2C)
    gamma = h[:, :C]
    beta = h[:, C:]

    # ---- layout padding: lanes multiple of 128, sublanes multiple of 8 ---
    HW_pad = _round_up(HW, 128)
    C_pad8 = _round_up(C, 8)

    # ---- channel tile from VMEM budget (in + out, double-buffered) -------
    cap = _vmem_capacity_bytes()
    budget = int(cap * 0.55)
    max_tc = budget // (4 * HW_pad * itemsize)       # ~4 tile copies live
    tc = min(C_pad8, max(8, (max_tc // 8) * 8))
    C_pad = _round_up(C_pad8, tc)                    # blocks divide exactly

    x_flat = x.reshape(N, C, HW)
    x_flat = jnp.pad(x_flat, ((0, 0), (0, C_pad - C), (0, HW_pad - HW)))
    gamma = jnp.pad(gamma, ((0, 0), (0, C_pad - C))).reshape(N, C_pad, 1)
    beta = jnp.pad(beta, ((0, 0), (0, C_pad - C))).reshape(N, C_pad, 1)

    needed = 4 * tc * HW_pad * itemsize + 16 * tc * 4
    vmem_limit = int(max(32 * 1024 * 1024,
                         min(needed + (8 << 20), int(cap * 0.85))))

    kernel = functools.partial(_adain_kernel, hw_true=HW, hw_pad=HW_pad)

    out_flat = pl.pallas_call(
        kernel,
        out_shape=jax.ShapeDtypeStruct((N, C_pad, HW_pad), x.dtype),
        grid_spec=pltpu.PrefetchScalarGridSpec(
            num_scalar_prefetch=0,
            grid=(N, C_pad // tc),
            in_specs=[
                pl.BlockSpec((1, tc, 1), lambda n, c: (n, c, 0)),       # gamma
                pl.BlockSpec((1, tc, 1), lambda n, c: (n, c, 0)),       # beta
                pl.BlockSpec((1, tc, HW_pad), lambda n, c: (n, c, 0)),  # x
            ],
            out_specs=pl.BlockSpec((1, tc, HW_pad), lambda n, c: (n, c, 0)),
        ),
        compiler_params=pltpu.CompilerParams(
            dimension_semantics=("parallel", "parallel"),
            vmem_limit_bytes=vmem_limit,
        ),
    )(gamma, beta, x_flat)

    return out_flat[:, :C, :HW].reshape(N, C, H, W)


def adain_reference(x, s, fc_w, fc_b):
    """Pure-JAX reference matching the PyTorch forward."""
    h = s @ fc_w.T + fc_b
    N, C = x.shape[0], x.shape[1]
    h = h.reshape(N, 2 * C, 1, 1)
    gamma, beta = h[:, :C], h[:, C:]
    mean = jnp.mean(x, axis=(2, 3), keepdims=True)
    var = jnp.var(x, axis=(2, 3), keepdims=True)   # biased, like InstanceNorm2d
    x_hat = (x - mean) / jnp.sqrt(var + EPS)
    return (1.0 + gamma) * x_hat + beta


if __name__ == "__main__":
    # Small shapes consistent with the module: batch=2, channels=4,
    # spatial=16x16, style_dim=8.
    N, C, H, W = 2, 4, 16, 16
    style_dim = 8

    key = jax.random.PRNGKey(0)
    kx, ks, kw, kb = jax.random.split(key, 4)

    x = jax.random.normal(kx, (N, C, H, W), dtype=jnp.float32)
    s = jax.random.normal(ks, (N, style_dim), dtype=jnp.float32)

    bound = 1.0 / (style_dim ** 0.5)
    fc_w = jax.random.uniform(kw, (2 * C, style_dim), jnp.float32, -bound, bound)
    fc_b = jax.random.uniform(kb, (2 * C,), jnp.float32, -bound, bound)

    out = adain_pallas(x, s, fc_w, fc_b)
    out = jax.block_until_ready(out)

    ref = adain_reference(x, s, fc_w, fc_b)
    assert out.shape == (N, C, H, W)
    assert jnp.allclose(out, ref, atol=1e-4, rtol=1e-4), "mismatch vs reference"

    print("KERNEL_OK")
</pallas_src>

<mosaic_0001>
module attributes {stable_mosaic.version = 11 : i64} {
  func.func @_adain_kernel(%arg0: i32, %arg1: i32, %arg2: memref<1x8x1xf32, #tpu.memory_space<vmem>>, %arg3: memref<1x8x1xf32, #tpu.memory_space<vmem>>, %arg4: memref<1x8x256xf32, #tpu.memory_space<vmem>>, %arg5: memref<1x8x256xf32, #tpu.memory_space<vmem>>) attributes {dimension_semantics = [#tpu.dimension_semantics<parallel>, #tpu.dimension_semantics<parallel>], iteration_bounds = array<i64: 2, 1>, scalar_prefetch = 0 : i64, scratch_operands = 0 : i64, tpu.core_type = #tpu.core_type<tc>, window_params = [{transform_indices = @transform_0, window_bounds = array<i64: 1, 8, 1>}, {transform_indices = @transform_1, window_bounds = array<i64: 1, 8, 1>}, {transform_indices = @transform_2, window_bounds = array<i64: 1, 8, 256>}, {transform_indices = @transform_3, window_bounds = array<i64: 1, 8, 256>}]} {
    %c0 = arith.constant 0 : index
    %c0_0 = arith.constant 0 : index
    %c0_1 = arith.constant 0 : index
    %0 = vector.load %arg4[%c0, %c0_0, %c0_1] : memref<1x8x256xf32, #tpu.memory_space<vmem>>, vector<1x8x256xf32>
    %cst = arith.constant dense<0.000000e+00> : vector<1x8xf32>
    %1 = vector.multi_reduction <add>, %0, %cst [2] : vector<1x8x256xf32> to vector<1x8xf32>
    %2 = vector.shape_cast %1 : vector<1x8xf32> to vector<1x8x1xf32>
    %cst_2 = arith.constant 2.560000e+02 : f32
    %3 = vector.broadcast %cst_2 : f32 to vector<1x8x1xf32>
    %4 = arith.divf %2, %3 : vector<1x8x1xf32>
    %5 = vector.broadcast %4 : vector<1x8x1xf32> to vector<1x8x256xf32>
    %6 = arith.subf %0, %5 : vector<1x8x256xf32>
    %7 = arith.mulf %6, %6 : vector<1x8x256xf32>
    %cst_3 = arith.constant dense<0.000000e+00> : vector<1x8xf32>
    %8 = vector.multi_reduction <add>, %7, %cst_3 [2] : vector<1x8x256xf32> to vector<1x8xf32>
    %9 = vector.shape_cast %8 : vector<1x8xf32> to vector<1x8x1xf32>
    %cst_4 = arith.constant 2.560000e+02 : f32
    %10 = vector.broadcast %cst_4 : f32 to vector<1x8x1xf32>
    %11 = arith.divf %9, %10 : vector<1x8x1xf32>
    %c0_5 = arith.constant 0 : index
    %c0_6 = arith.constant 0 : index
    %c0_7 = arith.constant 0 : index
    %12 = vector.load %arg2[%c0_5, %c0_6, %c0_7] : memref<1x8x1xf32, #tpu.memory_space<vmem>>, vector<1x8x1xf32>
    %cst_8 = arith.constant 1.000000e+00 : f32
    %13 = vector.broadcast %cst_8 : f32 to vector<1x8x1xf32>
    %14 = arith.addf %13, %12 : vector<1x8x1xf32>
    %cst_9 = arith.constant 9.99999974E-6 : f32
    %15 = vector.broadcast %cst_9 : f32 to vector<1x8x1xf32>
    %16 = arith.addf %11, %15 : vector<1x8x1xf32>
    %17 = math.rsqrt %16 : vector<1x8x1xf32>
    %18 = arith.mulf %14, %17 : vector<1x8x1xf32>
    %c0_10 = arith.constant 0 : index
    %c0_11 = arith.constant 0 : index
    %c0_12 = arith.constant 0 : index
    %19 = vector.load %arg3[%c0_10, %c0_11, %c0_12] : memref<1x8x1xf32, #tpu.memory_space<vmem>>, vector<1x8x1xf32>
    %20 = arith.mulf %4, %18 : vector<1x8x1xf32>
    %21 = arith.subf %19, %20 : vector<1x8x1xf32>
    %22 = vector.broadcast %18 : vector<1x8x1xf32> to vector<1x8x256xf32>
    %23 = arith.mulf %0, %22 : vector<1x8x256xf32>
    %24 = vector.broadcast %21 : vector<1x8x1xf32> to vector<1x8x256xf32>
    %25 = arith.addf %23, %24 : vector<1x8x256xf32>
    %c0_13 = arith.constant 0 : index
    %c0_14 = arith.constant 0 : index
    %c0_15 = arith.constant 0 : index
    %26 = vector.load %arg5[%c0_13, %c0_14, %c0_15] : memref<1x8x256xf32, #tpu.memory_space<vmem>>, vector<1x8x256xf32>
    tpu.vector_store %arg5[%c0_13, %c0_14, %c0_15], %25 {strides = array<i32>} : memref<1x8x256xf32, #tpu.memory_space<vmem>>, vector<1x8x256xf32>,
    return
  }
  func.func @transform_0(%arg0: i32, %arg1: i32) -> (i32, i32, i32) {
    %c0_i32 = arith.constant 0 : i32
    %c0_i32_0 = arith.constant 0 : i32
    return %arg0, %arg1, %c0_i32 : i32, i32, i32
  }
  func.func @transform_1(%arg0: i32, %arg1: i32) -> (i32, i32, i32) {
    %c0_i32 = arith.constant 0 : i32
    %c0_i32_0 = arith.constant 0 : i32
    return %arg0, %arg1, %c0_i32 : i32, i32, i32
  }
  func.func @transform_2(%arg0: i32, %arg1: i32) -> (i32, i32, i32) {
    %c0_i32 = arith.constant 0 : i32
    %c0_i32_0 = arith.constant 0 : i32
    return %arg0, %arg1, %c0_i32 : i32, i32, i32
  }
  func.func @transform_3(%arg0: i32, %arg1: i32) -> (i32, i32, i32) {
    %c0_i32 = arith.constant 0 : i32
    %c0_i32_0 = arith.constant 0 : i32
    return %arg0, %arg1, %c0_i32 : i32, i32, i32
  }
}

</mosaic_0001>

<bundles_post_ra>
// kernel: tpu_custom_call.1
= control target key start
LH: loop header
LB: loop body
LE: loop exit
PB: predicated region body
PF: predicated region fallthrough
CT: control target
= control target key end

     0   :  { %8 = vsyncpa [#allocation3], 0  ;;  %s724_s0 = inlined_call_operand.vmem [shape: f32[2,8,1], index: 0, kind: input, shape index: {}]   ;;  %s725_s1 = inlined_call_operand.vmem [shape: f32[2,8,1], index: 1, kind: input, shape index: {}]   ;;  %s726_s2 = inlined_call_operand.vmem [shape: f32[2,8,256], index: 2, kind: input, shape index: {}]   ;;  %s727_s3 = inlined_call_operand.hbm [shape: f32[2,8,256], index: 3, kind: output, shape index: {}]  }
   0x1   :  { %10 = vsyncpa [#allocation3 + $0x1], 0  ;;  %s617_s12 = smov 0   ;;  %s619_s13 = smov 0  }
   0x2   :  { %s621_s14 = smov 0   ;;  %s623_s15 = smov 0  }
   0x3   :  { %s625_s16 = smov 0   ;;  %s627_s17 = smov 0  }
   0x4 LB: > { %s435_s18 = sadd.s32 4294967295, %s593_s17   ;;  %s436_s19 = sadd.s32 4294967294, %s593_s17   ;;  %s593_s17 = sphi %s627_s17, %s16_s17   ;;  %s589_s16 = sphi %s625_s16, %s734_s16   ;;  %s585_s15 = sphi %s623_s15, %s733_s15   ;;  %s581_s14 = sphi %s621_s14, %s732_s14   ;;  %s577_s13 = sphi %s619_s13, %s731_s13   ;;  %s573_s12 = sphi %s617_s12, %s730_s12  }
   0x5   : > { %s28_s20 = sadd.s32 1, %s589_s16  ;;  %s121_s21 = sadd.s32 1, %s581_s14 }
   0x6   : > { %p30_p0 = scmp.ge.s32.totalorder %s28_s20, 2  ;;  %p131_p1 = scmp.ne.s32.totalorder %s581_s14, %s577_s13 }
   0x7   : > { %p132_p2 = scmp.eq.s32.totalorder %s435_s18, 1  ;;  %p137_p3 = scmp.ne.s32.totalorder %s577_s13, %s573_s12 }
   0x8   : > { %s736_s20 = smov (%p30_p0, %s28_s20), 0  ;;  %p138_p5 = scmp.eq.s32.totalorder %s436_s19, 1 }
   0x9   : > { %p657_p4 = por %p132_p2, %p131_p1  ;;  %s116_s23 = ssub.s32 %s589_s16, %s736_s20 }
   0xa   : > { %p439_p6 = scmp.ge.s32.totalorder %s593_s17, 1  ;;  %p119_p7 = scmp.eq.s32.totalorder %s116_s23, 0 }
   0xb   : > { %p664_p8 = por %p138_p5, %p137_p3  ;;  %p188_p9 = scmp.lt.s32.totalorder %s593_s17, 3 }
   0xc   : > { %s670_s25 = scalar_select %p119_p7, %s581_s14, %s121_s21  }
   0xd   : > { %p189_p10 = pnand %p439_p6, %p188_p9 }
   0xe   : > { %p230_p11 = scmp.lt.s32.totalorder (!%p189_p10), %s585_s15, 1  ;;  %s227_s11 = sand.u32 (!%p189_p10), 1, %s577_s13  }
   0xf   : > { %192 = sbr.rel (%p189_p10) target bundleno = 420 (0x1a4), region = 32  ;;  %s440_s18 = sshll.u32 (!%p189_p10), %s227_s11, 4 }
  0x10   : > { %s451_s19 = sshll.u32 (!%p189_p10), %s585_s15, 4 }
  0x14   : > { %s674_s26 = scalar_select %p230_p11, %s585_s15, 1  ;;  %v595_v3 = vmov 256.0   ;;  %v596_v17 = vmov 0  }
  0x15   : > { %511 = vrcp.f32 %v595_v3  ;;  %509 = vset.pattern.permute.xlu1 %v596_v17  ;;  %510 = vset.pattern.permute.xlu0 %v596_v17 }
  0x16   : > { %s450_s27 = sshll.u32 %s674_s26, 4  ;;  %s441_s4 = sshll.u32 %s674_s26, 3 }
  0x17   : > { %s252_s30 = scalar_lea.vmem %s726_s2, %s450_s27  ;;  %s236_s7 = scalar_lea.vmem %s724_s0, %s441_s4 }
  0x18   : > { %v253_v0 = vld [vmem:[%s252_s30] sm:$0xff]  ;;  %v254_v1 = vld [vmem:[%s252_s30 + $0x8] sm:$0xff]  ;;  %s243_s10 = scalar_lea.vmem %s725_s1, %s441_s4  ;;  %s321_s26 = scalar_lea.hbm %s727_s3, %s451_s19 }
  0x19   : > { %v255_v2 = vadd.f32 %v254_v1, %v253_v0  ;;  %v274_v25 = vld [vmem:[%s236_s7] sm:$0xff]  ;;  %s229_s27 = scalar_lea.vmem [#allocation2], %s440_s18  ;;  %s325_s29 = sshll.u32 %s321_s26, 4  ;;  %s326_s29 = int_to_ptr.hbm [resolvable:$true] %s325_s29 }
  0x1a   : > { %v275_v27 = vadd.f32 1.0, %v274_v25  ;;  %v288_v32 = vld [vmem:[%s243_s10] sm:$0xff]  ;;  %s323_s28 = sshll.u32 %s229_s27, 4  ;;  %s308_s30 = scalar_lea.sflag [#allocation3], %s227_s11  ;;  %s324_s28 = int_to_ptr.vmem [resolvable:$true] %s323_s28 }
  0x1b   : > { %256 = vadd.xlane.f32.xlu0 %v255_v2  ;;  %v512_v4 = vpop.eup %511  ;;  %s529_s4 = sshra.s32 %s326_s29, 4  ;;  %s535_s7 = scalar_lea.hbm %s727_s3, 32  ;;  %s530_s4 = int_to_ptr.hbm [resolvable:$true] %s529_s4 }
  0x1c   : > { %v259_v5 = vmul.f32 256.0, %v512_v4  ;;  %vm263_vm0 = vweird.f32 %v512_v4  ;;  %s531_s15 = scalar_lea.hbm %s530_s4, 16  ;;  %p536_p1 = scmp.lt.s32.totalorder %s530_s4, %s727_s3 }
  0x1d   : > { %p532_p12 = scmp.ne.s32.totalorder %s530_s4, %s531_s15  ;;  %p537_p2 = scmp.lt.s32.totalorder %s535_s7, %s531_s15 }
  0x1e   : > { %v260_v6 = vsub.f32 1.0, %v259_v5 }
  0x1f   : > { %p533_p13 = pnand %p532_p12, %p657_p4  ;;  %p538_p3 = por %p537_p2, %p536_p1 }
  0x20   : > { %v261_v7 = vmul.f32 %v512_v4, %v260_v6 }
  0x21   : > { %p534_p0 = pneg %p533_p13 }
  0x22   : > { %v262_v8 = vadd.f32 %v512_v4, %v261_v7 }
  0x23   : > { %p539_p5 = pnand %p538_p3, %p534_p0 }
  0x24   : > { %v264_v9 = vsel %vm263_vm0, %v512_v4, %v262_v8 }
  0x8e   : > { %v257_v10 = vpop.xlane.xlu0 %256 }
  0x8f   : > { %v265_v11 = vmul.f32 %v264_v9, %v257_v10 }
  0x91   : > { %v266_v12 = vsub.f32 %v253_v0, %v265_v11  ;;  %v267_v13 = vsub.f32 %v254_v1, %v265_v11 }
  0x93   : > { %v268_v14 = vmul.f32 %v266_v12, %v266_v12  ;;  %v269_v15 = vmul.f32 %v267_v13, %v267_v13 }
  0x95   : > { %v270_v16 = vadd.f32 %v269_v15, %v268_v14 }
  0x97   : > { %271 = vadd.xlane.f32.xlu0 %v270_v16 }
 0x10a   : > { %v272_v18 = vpop.xlane.xlu0 %271 }
 0x10b   : > { %v273_v19 = vmul.f32 %v272_v18, %v264_v9 }
 0x10d   : > { %v276_v20 = vadd.f32 1e-05, %v273_v19 }
 0x10f   : > { %513 = vrsqrt.f32 %v276_v20  ;;  %vm283_vm2 = vweird.f32 %v276_v20 }
 0x115   : > { %v514_v21 = vpop.eup %513 }
 0x116   : > { %v278_v22 = vmul.f32 %v514_v21, %v276_v20  ;;  %vm284_vm1 = vweird.f32 %v514_v21 }
 0x117   : > { %vm285_vm3 = vmor %vm283_vm2, %vm284_vm1 }
 0x118   : > { %v279_v23 = vmul.f32 %v514_v21, %v278_v22 }
 0x11a   : > { %v280_v24 = vmul.f32 0.5, %v279_v23 }
 0x11c   : > { %v281_v26 = vsub.f32 1.5, %v280_v24 }
 0x11e   : > { %v282_v28 = vmul.f32 %v514_v21, %v281_v26 }
 0x120   : > { %v286_v29 = vsel %vm285_vm3, %v514_v21, %v282_v28 }
 0x121   : > { %v287_v30 = vmul.f32 %v286_v29, %v275_v27 }
 0x123   : > { %293 = vperm.xlu1 %509, %v287_v30   ;;  %v289_v31 = vmul.f32 %v287_v30, %v265_v11 }
 0x125   : > { %v290_v33 = vsub.f32 %v288_v32, %v289_v31 }
 0x12b   : > { %300 = vperm.xlu1 %509, %v290_v33  }
 0x195   : > { %v294_v34 = vpop.permute.xlu1 %293 }
 0x196   : > { %v296_v35 = vmul.f32 %v294_v34, %v253_v0  ;;  %v297_v36 = vmul.f32 %v294_v34, %v254_v1 }
 0x19d   : > { %v301_v37 = vpop.permute.xlu1 %300 }
 0x19e   : > { %v303_v38 = vadd.f32 %v301_v37, %v296_v35  ;;  %v304_v39 = vadd.f32 %v301_v37, %v297_v36 }
 0x1a0   : > { %305 = vst [vmem:[%s229_s27] sm:$0xff] %v303_v38 }
 0x1a1   : > { %306 = vst [vmem:[%s229_s27 + $0x8] sm:$0xff] %v304_v39 }
 0x1a2   : > { %542 = shalt.err (!%p539_p5)
}
 0x1a3   : > { %452 = dma.vmem_to_hbm [thread:$0]  (%p657_p4), %s324_s28, 256, %s326_s29, %s308_s30  }
 0x1a4 PF: > { %p458_p6 = scmp.ge.s32.totalorder %s593_s17, 2  ;;  %s337_s10 = sand.u32 1, %s573_s12  }
 0x1a5   : > { %s338_s11 = scalar_lea.sflag [#allocation3], %s337_s10 }
 0x1a6   : > { %p455_p7 = pnand %p458_p6, %p664_p8 }
 0x1a8   : > { %p456_p9 = pneg %p455_p7 }
 0x1aa   : > { %568 = dma.done.wait (%p456_p9), %s338_s11, 256  }
 0x1ab   : > { %570 = vsyncadd (%p456_p9), %s338_s11, 4294967040  ;;  %s16_s17 = sadd.s32 1, %s593_s17   ;;  %s730_s12 = smov %s577_s13 }
 0x1ac   : > { %p13_p10 = scmp.ge.s32.totalorder %s16_s17, 4   ;;  %s731_s13 = smov %s581_s14 }
 0x1ad   : > { %s732_s14 = smov %s670_s25  ;;  %s733_s15 = smov %s589_s16 }
 0x1ae   : > { %s734_s16 = smov %s736_s20  ;;  %15 = sbr.rel (!%p13_p10) target bundleno = 4 (0x4), region = 73 }
 0x1b3   :  { %344 = vsyncpa [#allocation3], 1 }
 0x1b4   :  { %346 = vsyncpa [#allocation3 + $0x1], 1 }

</bundles_post_ra>
